<compile_context>
chip_gen: v6e
topology: v6e:2x2x1
jax: 0.10.0
libtpu: 0.0.40
codegen_flags: <defaults>
</compile_context>

<pallas_src>
import jax
import jax.numpy as jnp
from jax.experimental import pallas as pl
from jax.experimental.pallas import tpu as pltpu

_SUBLANE = 8
_LANE = 128
# Per-tile byte budget per operand (x, y, out). With double buffering the total
# pipelined footprint is ~6x this (~12 MiB) — fits every generation's scoped
# VMEM default without spilling.
_TILE_BYTES_BUDGET = 2 * 1024 * 1024
_VMEM_LIMIT_BYTES = 32 * 1024 * 1024   # < v7x 64 MiB physical; >= all defaults


def _round_up(a, b):
    return ((a + b - 1) // b) * b


def _pick_row_tile(rows, cols, itemsize):
    """Largest multiple-of-8 row tile within the per-operand byte budget."""
    tm = _TILE_BYTES_BUDGET // max(1, cols * itemsize)
    tm = max(_SUBLANE, (tm // _SUBLANE) * _SUBLANE)
    tm = min(tm, _round_up(rows, _SUBLANE))
    return int(tm)


def _scaled_add_kernel(x_ref, y_ref, sx_ref, sy_ref, o_ref):
    # (TM, cols) tiles; (TM, 1) scale columns broadcast across the lane axis.
    o_ref[...] = x_ref[...] * sx_ref[...] + y_ref[...] * sy_ref[...]


def _add_kernel(x_ref, y_ref, o_ref):
    o_ref[...] = x_ref[...] + y_ref[...]


def _compiler_params():
    return pltpu.CompilerParams(
        dimension_semantics=("parallel",),      # shard row tiles across TCs (v7x)
        vmem_limit_bytes=_VMEM_LIMIT_BYTES,
    )


def _call_scaled_add(x2, y2, sx_row, sy_row, tm):
    rows, cols = x2.shape
    grid = (pl.cdiv(rows, tm),)
    return pl.pallas_call(
        _scaled_add_kernel,
        out_shape=jax.ShapeDtypeStruct((rows, cols), x2.dtype),
        grid_spec=pltpu.PrefetchScalarGridSpec(
            num_scalar_prefetch=0,
            grid=grid,
            in_specs=[
                pl.BlockSpec((tm, cols), lambda i: (i, 0)),
                pl.BlockSpec((tm, cols), lambda i: (i, 0)),
                pl.BlockSpec((tm, 1), lambda i: (i, 0)),
                pl.BlockSpec((tm, 1), lambda i: (i, 0)),
            ],
            out_specs=pl.BlockSpec((tm, cols), lambda i: (i, 0)),
        ),
        compiler_params=_compiler_params(),
    )(x2, y2, sx_row, sy_row)


def _call_plain_add(x2, y2, tm):
    rows, cols = x2.shape
    grid = (pl.cdiv(rows, tm),)
    return pl.pallas_call(
        _add_kernel,
        out_shape=jax.ShapeDtypeStruct((rows, cols), x2.dtype),
        grid_spec=pltpu.PrefetchScalarGridSpec(
            num_scalar_prefetch=0,
            grid=grid,
            in_specs=[
                pl.BlockSpec((tm, cols), lambda i: (i, 0)),
                pl.BlockSpec((tm, cols), lambda i: (i, 0)),
            ],
            out_specs=pl.BlockSpec((tm, cols), lambda i: (i, 0)),
        ),
        compiler_params=_compiler_params(),
    )(x2, y2)


def eltwise_module_forward(x, y, scale_x=None, scale_y=None, *, enable=True):
    """Pallas implementation of EltWiseModule.forward.

    Args:
      x, y: (N, C, H, W) float arrays (NCHW, PyTorch convention).
      scale_x, scale_y: optional (C,) per-channel scales (the reference
        coordinate() always produces ones).
      enable: matches EltWiseModule.enable.

    Returns:
      (N, C, H, W) array, same dtype as x.
    """
    N, C, H, W = x.shape
    assert y.shape == x.shape

    rows = N * C
    cols = H * W
    cols_p = _round_up(cols, _LANE)          # lane-dense last dim
    itemsize = jnp.dtype(x.dtype).itemsize
    tm = _pick_row_tile(rows, cols_p, itemsize)

    # Glue (plain JAX): flatten to a 2-D lane-dense slab; pad lanes if needed.
    x2 = x.reshape(rows, cols)
    y2 = y.reshape(rows, cols)
    if cols_p != cols:
        pad = ((0, 0), (0, cols_p - cols))
        x2 = jnp.pad(x2, pad)
        y2 = jnp.pad(y2, pad)

    use_scales = enable and (scale_x is not None or scale_y is not None)

    if use_scales:
        if scale_x is None:
            scale_x = jnp.ones((C,), dtype=x.dtype)
        if scale_y is None:
            scale_y = jnp.ones((C,), dtype=x.dtype)
        # Per-channel -> per-row (N*C, 1) column vectors (row = n*C + c).
        # NOTE: multiply happens in x.dtype; the reference scales are exactly
        # 1.0 so promotion differences vs torch are irrelevant.
        sx_row = jnp.tile(scale_x.astype(x.dtype), (N,)).reshape(rows, 1)
        sy_row = jnp.tile(scale_y.astype(x.dtype), (N,)).reshape(rows, 1)
        out2 = _call_scaled_add(x2, y2, sx_row, sy_row, tm)
    else:
        # enable=False (or scales omitted, which the reference makes ones):
        # drop the scale streams entirely — fewer DMAs, less VMEM.
        out2 = _call_plain_add(x2, y2, tm)

    if cols_p != cols:
        out2 = out2[:, :cols]
    return out2.reshape(N, C, H, W)


if __name__ == "__main__":
    key = jax.random.PRNGKey(0)
    kx, ky = jax.random.split(key)

    N, C, H, W = 2, 4, 16, 16
    x = jax.random.normal(kx, (N, C, H, W), dtype=jnp.float32)
    y = jax.random.normal(ky, (N, C, H, W), dtype=jnp.float32)

    # Deterministic per-channel scales; the reference coordinate() always
    # yields ones (its loops never mutate the arrays).
    scale_x = jnp.ones((C,), dtype=jnp.float32)
    scale_y = jnp.ones((C,), dtype=jnp.float32)

    # Scaled path (enable=True).
    out = eltwise_module_forward(x, y, scale_x, scale_y, enable=True)
    out = jax.block_until_ready(out)
    ref = x * scale_x.reshape(1, C, 1, 1) + y * scale_y.reshape(1, C, 1, 1)
    assert out.shape == (N, C, H, W)
    assert jnp.allclose(out, ref, atol=1e-6), "mismatch vs reference (scaled)"

    # Plain-add fast path (enable=False).
    out_plain = jax.block_until_ready(eltwise_module_forward(x, y, enable=False))
    assert jnp.allclose(out_plain, x + y, atol=1e-6), "mismatch vs reference (plain)"

    print("KERNEL_OK")
</pallas_src>

<mosaic_0001>
module attributes {stable_mosaic.version = 11 : i64} {
  func.func @_scaled_add_kernel(%arg0: i32, %arg1: memref<8x256xf32, #tpu.memory_space<vmem>>, %arg2: memref<8x256xf32, #tpu.memory_space<vmem>>, %arg3: memref<8x1xf32, #tpu.memory_space<vmem>>, %arg4: memref<8x1xf32, #tpu.memory_space<vmem>>, %arg5: memref<8x256xf32, #tpu.memory_space<vmem>>) attributes {dimension_semantics = [#tpu.dimension_semantics<parallel>], iteration_bounds = array<i64: 1>, scalar_prefetch = 0 : i64, scratch_operands = 0 : i64, tpu.core_type = #tpu.core_type<tc>, window_params = [{transform_indices = @transform_0, window_bounds = array<i64: 8, 256>}, {transform_indices = @transform_1, window_bounds = array<i64: 8, 256>}, {transform_indices = @transform_2, window_bounds = array<i64: 8, 1>}, {transform_indices = @transform_3, window_bounds = array<i64: 8, 1>}, {transform_indices = @transform_4, window_bounds = array<i64: 8, 256>}]} {
    %c0 = arith.constant 0 : index
    %c0_0 = arith.constant 0 : index
    %0 = vector.load %arg1[%c0, %c0_0] : memref<8x256xf32, #tpu.memory_space<vmem>>, vector<8x256xf32>
    %c0_1 = arith.constant 0 : index
    %c0_2 = arith.constant 0 : index
    %1 = vector.load %arg3[%c0_1, %c0_2] : memref<8x1xf32, #tpu.memory_space<vmem>>, vector<8x1xf32>
    %2 = vector.broadcast %1 : vector<8x1xf32> to vector<8x256xf32>
    %3 = arith.mulf %0, %2 : vector<8x256xf32>
    %c0_3 = arith.constant 0 : index
    %c0_4 = arith.constant 0 : index
    %4 = vector.load %arg2[%c0_3, %c0_4] : memref<8x256xf32, #tpu.memory_space<vmem>>, vector<8x256xf32>
    %c0_5 = arith.constant 0 : index
    %c0_6 = arith.constant 0 : index
    %5 = vector.load %arg4[%c0_5, %c0_6] : memref<8x1xf32, #tpu.memory_space<vmem>>, vector<8x1xf32>
    %6 = vector.broadcast %5 : vector<8x1xf32> to vector<8x256xf32>
    %7 = arith.mulf %4, %6 : vector<8x256xf32>
    %8 = arith.addf %3, %7 : vector<8x256xf32>
    %c0_7 = arith.constant 0 : index
    %c0_8 = arith.constant 0 : index
    %9 = vector.load %arg5[%c0_7, %c0_8] : memref<8x256xf32, #tpu.memory_space<vmem>>, vector<8x256xf32>
    tpu.vector_store %arg5[%c0_7, %c0_8], %8 {strides = array<i32>} : memref<8x256xf32, #tpu.memory_space<vmem>>, vector<8x256xf32>,
    return
  }
  func.func @transform_0(%arg0: i32) -> (i32, i32) {
    %c0_i32 = arith.constant 0 : i32
    %c0_i32_0 = arith.constant 0 : i32
    return %arg0, %c0_i32 : i32, i32
  }
  func.func @transform_1(%arg0: i32) -> (i32, i32) {
    %c0_i32 = arith.constant 0 : i32
    %c0_i32_0 = arith.constant 0 : i32
    return %arg0, %c0_i32 : i32, i32
  }
  func.func @transform_2(%arg0: i32) -> (i32, i32) {
    %c0_i32 = arith.constant 0 : i32
    %c0_i32_0 = arith.constant 0 : i32
    return %arg0, %c0_i32 : i32, i32
  }
  func.func @transform_3(%arg0: i32) -> (i32, i32) {
    %c0_i32 = arith.constant 0 : i32
    %c0_i32_0 = arith.constant 0 : i32
    return %arg0, %c0_i32 : i32, i32
  }
  func.func @transform_4(%arg0: i32) -> (i32, i32) {
    %c0_i32 = arith.constant 0 : i32
    %c0_i32_0 = arith.constant 0 : i32
    return %arg0, %c0_i32 : i32, i32
  }
}

</mosaic_0001>

<bundles_post_ra>
// kernel: tpu_custom_call.1
= control target key start
LH: loop header
LB: loop body
LE: loop exit
PB: predicated region body
PF: predicated region fallthrough
CT: control target
= control target key end

     0   :  { %9 = vsyncpa [#allocation3], 0  ;;  %s163_s0 = inlined_call_operand.vmem [shape: f32[8,256], index: 0, kind: input, shape index: {}]   ;;  %s164_s1 = inlined_call_operand.hbm [shape: f32[8,256], index: 1, kind: input, shape index: {}]   ;;  %s165_s2 = inlined_call_operand.vmem [shape: f32[8,1], index: 2, kind: input, shape index: {}]   ;;  %s166_s3 = inlined_call_operand.vmem [shape: f32[8,1], index: 3, kind: input, shape index: {}]   ;;  %s167_s4 = inlined_call_operand.hbm [shape: f32[8,256], index: 4, kind: output, shape index: {}]  }
   0x1   :  { %10 = vsyncpa [#allocation4], 0  ;;  %s117_s15 = smov [#allocation2]  }
   0x2   :  { %s19_s16 = sshll.u32 %s117_s15, 4  ;;  %s20_s16 = int_to_ptr.vmem [resolvable:$true] %s19_s16 }
   0x3   :  { %s81_s17 = scalar_lea.vmem %s20_s16, 256  ;;  %p86_p1 = scmp.lt.s32.totalorder %s20_s16, %s20_s16 }
   0x4   :  { %p82_p0 = scmp.ne.s32.totalorder %s20_s16, %s81_s17  ;;  %p87_p2 = scmp.lt.s32.totalorder %s81_s17, %s81_s17 }
   0x6   :  { %p88_p3 = por %p87_p2, %p86_p1 }
   0x8   :  { %p89_p4 = pnand %p88_p3, %p82_p0 }
   0xa   :  { %92 = shalt.err (!%p89_p4)
}
   0xb   :  { %22 = dma.hbm_to_vmem [thread:$0]  %s164_s1, 256, %s20_s16, [#allocation3]  }
   0xc   :  { %113 = dma.done.wait [#allocation3], 256  }
   0xd   :  { %114 = vsyncadd [#allocation3], 4294967040  ;;  %v118_v0 = vmov 0   ;;  %v32_v1 = vld [vmem:[%s165_s2] sm:$0xff]  ;;  %v31_v5 = vld [vmem:[%s163_s0 + $0x8] sm:$0xff]  ;;  %s119_s27 = smov [#allocation5]  }
   0xe   :  { %72 = vset.pattern.permute.xlu0 %v118_v0  ;;  %v42_v2 = vld [vmem:[%s166_s3] sm:$0xff]  ;;  %v41_v7 = vld [vmem:[#allocation2 + $0x8] sm:$0xff]  ;;  %s60_s2 = sshll.u32 %s119_s27, 4  ;;  %s61_s2 = int_to_ptr.vmem [resolvable:$true] %s60_s2 }
   0xf   :  { %35 = vperm.xlu0 %72, %v32_v1   ;;  %v30_v4 = vld [vmem:[%s163_s0] sm:$0xff]  ;;  %s93_s3 = scalar_lea.vmem %s61_s2, 256  ;;  %p98_p6 = scmp.lt.s32.totalorder %s61_s2, %s61_s2 }
  0x10   :  { %v40_v6 = vld [vmem:[#allocation2] sm:$0xff]  ;;  %p94_p5 = scmp.ne.s32.totalorder %s61_s2, %s93_s3  ;;  %p99_p7 = scmp.lt.s32.totalorder %s93_s3, %s93_s3 }
  0x12   :  { %p100_p8 = por %p99_p7, %p98_p6 }
  0x13   :  { %45 = vperm.xlu0 %72, %v42_v2  }
  0x14   :  { %p101_p9 = pnand %p100_p8, %p94_p5 }
  0x8a   :  { %v36_v3 = vpop.permute.xlu0 %35 }
  0x8b   :  { %v38_v9 = vmul.f32 %v36_v3, %v30_v4  ;;  %v39_v10 = vmul.f32 %v36_v3, %v31_v5 }
  0x8e   :  { %v46_v8 = vpop.permute.xlu0 %45 }
  0x8f   :  { %v48_v11 = vmul.f32 %v46_v8, %v40_v6  ;;  %v49_v12 = vmul.f32 %v46_v8, %v41_v7 }
  0x91   :  { %v50_v13 = vadd.f32 %v48_v11, %v38_v9  ;;  %v51_v14 = vadd.f32 %v49_v12, %v39_v10 }
  0x93   :  { %52 = vst [vmem:[#allocation5] sm:$0xff] %v50_v13  ;;  %53 = vst [vmem:[#allocation5 + $0x8] sm:$0xff] %v51_v14 }
  0x94   :  { %104 = shalt.err (!%p101_p9)
}
  0x95   :  { %63 = dma.vmem_to_hbm [thread:$0]  %s61_s2, 256, %s167_s4, [#allocation4]  }
  0x96   :  { %115 = dma.done.wait [#allocation4], 256  }
  0x97   :  { %116 = vsyncadd [#allocation4], 4294967040 }
  0x98   :  { %67 = vsyncpa [#allocation3], 1 }
  0x99   :  { %68 = vsyncpa [#allocation4], 1 }

</bundles_post_ra>
